<compile_context>
chip_gen: v5e
topology: v5e:2x2
jax: 0.10.0
libtpu: 0.0.40
codegen_flags: <defaults>
</compile_context>

<pallas_src>
import math
import functools

import jax
import jax.numpy as jnp
from jax import lax
from jax.experimental import pallas as pl
from jax.experimental.pallas import tpu as pltpu


_VMEM_LIMIT_BYTES = 48 * 1024 * 1024  # > v5e(16)/v6e(32) defaults, < v7x 64 MiB physical


# ---------------------------------------------------------------------------
# Tile helpers
# ---------------------------------------------------------------------------
def _pick_tile(dim, prefs=(512, 256, 128)):
    """Largest preferred tile that divides `dim`, else the full dimension."""
    for t in prefs:
        if t <= dim and dim % t == 0:
            return t
    return dim


def _pick_head_group(n_heads, d_head):
    """Heads per grid step so the lane (last) block dim is a multiple of 128,
    falling back to all heads (block == full D, which is always legal)."""
    if d_head % 128 == 0:
        return 1
    for hg in range(1, n_heads + 1):
        if n_heads % hg == 0 and (hg * d_head) % 128 == 0:
            return hg
    return n_heads


# ---------------------------------------------------------------------------
# Kernel 1: batched, tiled linear   y[p] = x[p] @ w[p]^T + b[p]
#   grid = (P, M/tm, N/tn, K/tk), f32 accumulator in VMEM, reduction axis last.
#   Weights stay untransposed (Dout, Din); dot_general contracts dim 1 x dim 1.
# ---------------------------------------------------------------------------
def _linear_kernel(x_ref, w_ref, b_ref, o_ref, acc_ref):
    @pl.when(pl.program_id(3) == 0)
    def _():
        acc_ref[...] = jnp.zeros_like(acc_ref)

    acc_ref[...] += lax.dot_general(
        x_ref[0], w_ref[0], (((1,), (1,)), ((), ())),
        preferred_element_type=jnp.float32,
    )

    @pl.when(pl.program_id(3) == pl.num_programs(3) - 1)
    def _():
        o_ref[0] = (acc_ref[...] + b_ref[0].astype(jnp.float32)).astype(o_ref.dtype)


def batched_linear(x, w, b):
    """x: (P, N, Din), w: (P, Dout, Din) (untransposed), b: (P, 1, Dout)."""
    P, N, Din = x.shape
    Dout = w.shape[1]

    tm = _pick_tile(N, (512, 256, 128))
    pad = 0
    if tm == N and (N > 512 or N % 8 != 0):
        pad = ((-N) % 512) if N > 512 else ((-N) % 8)
        x = jnp.pad(x, ((0, 0), (0, pad), (0, 0)))
        tm = _pick_tile(N + pad, (512, 256, 128))
    Np = N + pad

    tn = _pick_tile(Dout, (512, 256, 128))
    tk = _pick_tile(Din, (256, 128))
    # TODO(synk): Dout/Din without a 128 divisor fall back to full-dim blocks; fine for
    # typical d_model sizes, a pad+mask tail would be needed for ragged weight dims.

    grid = (P, Np // tm, Dout // tn, Din // tk)
    out = pl.pallas_call(
        _linear_kernel,
        out_shape=jax.ShapeDtypeStruct((P, Np, Dout), x.dtype),
        grid=grid,
        in_specs=[
            pl.BlockSpec((1, tm, tk), lambda p, i, j, k: (p, i, k)),
            pl.BlockSpec((1, tn, tk), lambda p, i, j, k: (p, j, k)),
            pl.BlockSpec((1, 1, tn), lambda p, i, j, k: (p, 0, j)),
        ],
        out_specs=pl.BlockSpec((1, tm, tn), lambda p, i, j, k: (p, i, j)),
        scratch_shapes=[pltpu.VMEM((tm, tn), jnp.float32)],
        compiler_params=pltpu.CompilerParams(
            dimension_semantics=("parallel", "parallel", "parallel", "arbitrary"),
            vmem_limit_bytes=_VMEM_LIMIT_BYTES,
        ),
    )(x, w, b)
    return out[:, :N] if pad else out


# ---------------------------------------------------------------------------
# Kernel 2: per-(batch, head-group, q-tile) scaled-dot-product attention.
#   Operates directly on the (B, S, D) layout; ctx written straight back to
#   (B, S, D).  One grid step handles `hg` heads (group width hg*d_head lanes).
# ---------------------------------------------------------------------------
def _attention_kernel(q_ref, k_ref, v_ref, ctx_ref, *maybe_attn,
                      scale, hg, d_head):
    attn_ref = maybe_attn[0] if maybe_attn else None

    q = q_ref[0] * jnp.asarray(scale, q_ref.dtype)   # scale folded into small q tile
    k = k_ref[0]                                      # (S,  gw)
    v = v_ref[0]                                      # (S,  gw)

    ctx_cols = []
    for h in range(hg):                               # static unroll over the head group
        lo, hi = h * d_head, (h + 1) * d_head
        qh, kh, vh = q[:, lo:hi], k[:, lo:hi], v[:, lo:hi]

        # scores = (q*scale) @ k^T  (contraction over d_head, no explicit transpose)
        s = lax.dot_general(qh, kh, (((1,), (1,)), ((), ())),
                            preferred_element_type=jnp.float32)  # (tq, S) f32

        m = jnp.max(s, axis=-1, keepdims=True)
        e = jnp.exp(s - m)
        denom = jnp.sum(e, axis=-1, keepdims=True)
        inv = 1.0 / denom                              # exact recip of (tq,1): ~free
        w = (e * inv).astype(v.dtype)                  # cast ONCE, reused below
        # TODO(synk): attention-weight dropout is identity in eval mode; not applied.
        # TODO(synk): mask / key_padding_mask path not implemented (module uses mask=None).

        if attn_ref is not None:
            attn_ref[0, h] = w.astype(attn_ref.dtype)

        ctx_cols.append(jnp.dot(w, vh, preferred_element_type=jnp.float32))

    # Single lane-dense store of the full (tq, gw) context block into (B,S,D).
    ctx_ref[0] = jnp.concatenate(ctx_cols, axis=-1).astype(ctx_ref.dtype)


def attention(q, k, v, n_heads, need_weights=True):
    B, S, D = q.shape
    d_head = D // n_heads
    scale = 1.0 / math.sqrt(d_head)

    hg = _pick_head_group(n_heads, d_head)   # heads per grid step
    gw = hg * d_head                          # lane width of each block
    n_groups = n_heads // hg

    tq = _pick_tile(S, (512, 256, 128))       # query tile (bounds VMEM)
    # TODO(synk): very large S with no 128 divisor falls back to full-row tiles;
    # a pad+mask tail (and online-softmax K-tiling) would be needed there.

    grid = (B, n_groups, S // tq)
    kernel = functools.partial(_attention_kernel, scale=scale, hg=hg, d_head=d_head)

    in_specs = [
        pl.BlockSpec((1, tq, gw), lambda b, g, i: (b, i, g)),
        pl.BlockSpec((1, S, gw), lambda b, g, i: (b, 0, g)),   # K resident over q-tiles
        pl.BlockSpec((1, S, gw), lambda b, g, i: (b, 0, g)),   # V resident over q-tiles
    ]
    ctx_shape = jax.ShapeDtypeStruct((B, S, D), q.dtype)
    ctx_spec = pl.BlockSpec((1, tq, gw), lambda b, g, i: (b, i, g))

    if need_weights:
        out_shape = (ctx_shape, jax.ShapeDtypeStruct((B, n_heads, S, S), q.dtype))
        out_specs = (ctx_spec,
                     pl.BlockSpec((1, hg, tq, S), lambda b, g, i: (b, g, i, 0)))
    else:
        out_shape = ctx_shape
        out_specs = ctx_spec

    res = pl.pallas_call(
        kernel,
        out_shape=out_shape,
        grid=grid,
        in_specs=in_specs,
        out_specs=out_specs,
        compiler_params=pltpu.CompilerParams(
            dimension_semantics=("parallel", "parallel", "arbitrary"),
            vmem_limit_bytes=_VMEM_LIMIT_BYTES,
        ),
    )(q, k, v)

    if need_weights:
        return res
    return res, None


# ---------------------------------------------------------------------------
# Full forward pass (glue in plain JAX, hot paths in Pallas)
# ---------------------------------------------------------------------------
def multihead_attention_forward(query, key, value, params, n_heads, need_weights=True):
    B, S, D = query.shape
    N = B * S

    # Fused Q/K/V projection: one pallas_call over a stack of 3 projections.
    x_stack = jnp.stack(
        [query.reshape(N, D), key.reshape(N, D), value.reshape(N, D)]
    )                                                            # (3, N, D)
    w_stack = jnp.stack([params["wq"], params["wk"], params["wv"]])  # (3, D, D) untransposed
    b_stack = jnp.stack([params["bq"], params["bk"], params["bv"]]).reshape(3, 1, D)

    qkv = batched_linear(x_stack, w_stack, b_stack)              # (3, N, D)
    q = qkv[0].reshape(B, S, D)
    k = qkv[1].reshape(B, S, D)
    v = qkv[2].reshape(B, S, D)

    ctx, attn_weights = attention(q, k, v, n_heads, need_weights=need_weights)

    out = batched_linear(
        ctx.reshape(1, N, D),
        params["wo"][None],
        params["bo"].reshape(1, 1, D),
    )[0].reshape(B, S, D)
    return out, attn_weights


# ---------------------------------------------------------------------------
# Pure-JAX reference (correctness check)
# ---------------------------------------------------------------------------
def reference_forward(query, key, value, params, n_heads):
    B, S, D = query.shape
    d_head = D // n_heads

    def lin(x, w, b):
        return x @ w.T + b

    q = lin(query, params["wq"], params["bq"])
    k = lin(key, params["wk"], params["bk"])
    v = lin(value, params["wv"], params["bv"])

    def split(x):
        return x.reshape(B, S, n_heads, d_head).transpose(0, 2, 1, 3)

    qh, kh, vh = split(q), split(k), split(v)
    scores = jnp.einsum("bhqd,bhkd->bhqk", qh, kh) / math.sqrt(d_head)
    attn = jax.nn.softmax(scores, axis=-1)
    ctx = jnp.einsum("bhqk,bhkd->bhqd", attn, vh)
    ctx = ctx.transpose(0, 2, 1, 3).reshape(B, S, D)
    out = lin(ctx, params["wo"], params["bo"])
    return out, attn


# ---------------------------------------------------------------------------
if __name__ == "__main__":
    # Small shapes: batch=2, seq=8, d_model=32, n_heads=4  (d_head=8)
    B, S, D, H = 2, 8, 32, 4
    key0 = jax.random.PRNGKey(0)
    ks = jax.random.split(key0, 12)

    bound = 1.0 / math.sqrt(D)  # PyTorch nn.Linear default init range
    params = {
        "wq": jax.random.uniform(ks[0], (D, D), jnp.float32, -bound, bound),
        "bq": jax.random.uniform(ks[1], (D,), jnp.float32, -bound, bound),
        "wk": jax.random.uniform(ks[2], (D, D), jnp.float32, -bound, bound),
        "bk": jax.random.uniform(ks[3], (D,), jnp.float32, -bound, bound),
        "wv": jax.random.uniform(ks[4], (D, D), jnp.float32, -bound, bound),
        "bv": jax.random.uniform(ks[5], (D,), jnp.float32, -bound, bound),
        "wo": jax.random.uniform(ks[6], (D, D), jnp.float32, -bound, bound),
        "bo": jax.random.uniform(ks[7], (D,), jnp.float32, -bound, bound),
    }

    query = jax.random.normal(ks[8], (B, S, D), jnp.float32)
    key_in = jax.random.normal(ks[9], (B, S, D), jnp.float32)
    value = jax.random.normal(ks[10], (B, S, D), jnp.float32)

    out, attn = multihead_attention_forward(query, key_in, value, params, H)
    out = jax.block_until_ready(out)
    attn = jax.block_until_ready(attn)

    ref_out, ref_attn = reference_forward(query, key_in, value, params, H)
    assert out.shape == (B, S, D) and attn.shape == (B, H, S, S)
    assert jnp.allclose(out, ref_out, atol=1e-4, rtol=1e-4), "output mismatch"
    assert jnp.allclose(attn, ref_attn, atol=1e-4, rtol=1e-4), "attn-weight mismatch"

    # Fast path (skips the (B,H,S,S) HBM write) must agree on the output too.
    out_nw, attn_nw = multihead_attention_forward(
        query, key_in, value, params, H, need_weights=False)
    out_nw = jax.block_until_ready(out_nw)
    assert attn_nw is None
    assert jnp.allclose(out_nw, ref_out, atol=1e-4, rtol=1e-4), "need_weights=False mismatch"

    print("KERNEL_OK")
</pallas_src>

<mosaic_0001>
module attributes {stable_mosaic.version = 11 : i64} {
  func.func @_linear_kernel(%arg0: i32, %arg1: i32, %arg2: i32, %arg3: i32, %arg4: memref<1x16x32xf32, #tpu.memory_space<vmem>>, %arg5: memref<1x32x32xf32, #tpu.memory_space<vmem>>, %arg6: memref<1x1x32xf32, #tpu.memory_space<vmem>>, %arg7: memref<1x16x32xf32, #tpu.memory_space<vmem>>, %arg8: memref<16x32xf32, #tpu.memory_space<vmem>>) attributes {dimension_semantics = [#tpu.dimension_semantics<parallel>, #tpu.dimension_semantics<parallel>, #tpu.dimension_semantics<parallel>, #tpu.dimension_semantics<arbitrary>], iteration_bounds = array<i64: 3, 1, 1, 1>, scalar_prefetch = 0 : i64, scratch_operands = 1 : i64, tpu.core_type = #tpu.core_type<tc>, window_params = [{transform_indices = @transform_0, window_bounds = array<i64: 1, 16, 32>}, {transform_indices = @transform_1, window_bounds = array<i64: 1, 32, 32>}, {transform_indices = @transform_2, window_bounds = array<i64: 1, 1, 32>}, {transform_indices = @transform_3, window_bounds = array<i64: 1, 16, 32>}]} {
    %c0_i32 = arith.constant 0 : i32
    %0 = arith.cmpi eq, %arg3, %c0_i32 : i32
    %1 = arith.extui %0 : i1 to i32
    %c0_i32_0 = arith.constant 0 : i32
    %2 = arith.cmpi ne, %1, %c0_i32_0 : i32
    scf.if %2 {
      %cst_12 = arith.constant 0.000000e+00 : f32
      %14 = vector.broadcast %cst_12 : f32 to vector<16x32xf32>
      %c0_13 = arith.constant 0 : index
      %c0_14 = arith.constant 0 : index
      %15 = vector.load %arg8[%c0_13, %c0_14] : memref<16x32xf32, #tpu.memory_space<vmem>>, vector<16x32xf32>
      tpu.vector_store %arg8[%c0_13, %c0_14], %14 {strides = array<i32>} : memref<16x32xf32, #tpu.memory_space<vmem>>, vector<16x32xf32>,
    } else {
    }
    %c0 = arith.constant 0 : index
    %c0_1 = arith.constant 0 : index
    %3 = vector.load %arg8[%c0, %c0_1] : memref<16x32xf32, #tpu.memory_space<vmem>>, vector<16x32xf32>
    %c0_2 = arith.constant 0 : index
    %c0_3 = arith.constant 0 : index
    %c0_4 = arith.constant 0 : index
    %4 = vector.load %arg4[%c0_2, %c0_3, %c0_4] : memref<1x16x32xf32, #tpu.memory_space<vmem>>, vector<1x16x32xf32>
    %5 = vector.shape_cast %4 : vector<1x16x32xf32> to vector<16x32xf32>
    %c0_5 = arith.constant 0 : index
    %c0_6 = arith.constant 0 : index
    %c0_7 = arith.constant 0 : index
    %6 = vector.load %arg5[%c0_5, %c0_6, %c0_7] : memref<1x32x32xf32, #tpu.memory_space<vmem>>, vector<1x32x32xf32>
    %7 = vector.shape_cast %6 : vector<1x32x32xf32> to vector<32x32xf32>
    %cst = arith.constant dense<0.000000e+00> : vector<16x32xf32>
    %8 = tpu.matmul %5, %7, %cst {dimension_numbers = #tpu.dot_dimension_numbers<[1], [1], [0], [0], [0, 0, 1, 0], [], []>} : vector<16x32xf32>, vector<32x32xf32>, vector<16x32xf32> -> vector<16x32xf32>
    %9 = arith.addf %3, %8 : vector<16x32xf32>
    %c0_8 = arith.constant 0 : index
    %c0_9 = arith.constant 0 : index
    %10 = vector.load %arg8[%c0_8, %c0_9] : memref<16x32xf32, #tpu.memory_space<vmem>>, vector<16x32xf32>
    tpu.vector_store %arg8[%c0_8, %c0_9], %9 {strides = array<i32>} : memref<16x32xf32, #tpu.memory_space<vmem>>, vector<16x32xf32>,
    %c0_i32_10 = arith.constant 0 : i32
    %11 = arith.cmpi eq, %arg3, %c0_i32_10 : i32
    %12 = arith.extui %11 : i1 to i32
    %c0_i32_11 = arith.constant 0 : i32
    %13 = arith.cmpi ne, %12, %c0_i32_11 : i32
    scf.if %13 {
      %c0_12 = arith.constant 0 : index
      %c0_13 = arith.constant 0 : index
      %14 = vector.load %arg8[%c0_12, %c0_13] : memref<16x32xf32, #tpu.memory_space<vmem>>, vector<16x32xf32>
      %c0_14 = arith.constant 0 : index
      %c0_15 = arith.constant 0 : index
      %c0_16 = arith.constant 0 : index
      %15 = vector.load %arg6[%c0_14, %c0_15, %c0_16] : memref<1x1x32xf32, #tpu.memory_space<vmem>>, vector<1x1x32xf32>
      %16 = vector.shape_cast %15 : vector<1x1x32xf32> to vector<1x32xf32>
      %17 = vector.broadcast %16 : vector<1x32xf32> to vector<16x32xf32>
      %18 = arith.addf %14, %17 : vector<16x32xf32>
      %c0_17 = arith.constant 0 : index
      %c0_18 = arith.constant 0 : index
      %c0_19 = arith.constant 0 : index
      %19 = vector.load %arg7[%c0_17, %c0_18, %c0_19] : memref<1x16x32xf32, #tpu.memory_space<vmem>>, vector<1x16x32xf32>
      %20 = vector.shape_cast %19 : vector<1x16x32xf32> to vector<16x32xf32>
      %21 = vector.shape_cast %18 : vector<16x32xf32> to vector<1x16x32xf32>
      tpu.vector_store %arg7[%c0_17, %c0_18, %c0_19], %21 {strides = array<i32>} : memref<1x16x32xf32, #tpu.memory_space<vmem>>, vector<1x16x32xf32>,
    } else {
    }
    return
  }
  func.func @transform_0(%arg0: i32, %arg1: i32, %arg2: i32, %arg3: i32) -> (i32, i32, i32) {
    %c0_i32 = arith.constant 0 : i32
    return %arg0, %arg1, %arg3 : i32, i32, i32
  }
  func.func @transform_1(%arg0: i32, %arg1: i32, %arg2: i32, %arg3: i32) -> (i32, i32, i32) {
    %c0_i32 = arith.constant 0 : i32
    return %arg0, %arg2, %arg3 : i32, i32, i32
  }
  func.func @transform_2(%arg0: i32, %arg1: i32, %arg2: i32, %arg3: i32) -> (i32, i32, i32) {
    %c0_i32 = arith.constant 0 : i32
    %c0_i32_0 = arith.constant 0 : i32
    return %arg0, %c0_i32, %arg2 : i32, i32, i32
  }
  func.func @transform_3(%arg0: i32, %arg1: i32, %arg2: i32, %arg3: i32) -> (i32, i32, i32) {
    %c0_i32 = arith.constant 0 : i32
    return %arg0, %arg1, %arg2 : i32, i32, i32
  }
}

</mosaic_0001>

<bundles_post_ra>
// kernel: tpu_custom_call.1
= control target key start
LH: loop header
LB: loop body
LE: loop exit
PB: predicated region body
PF: predicated region fallthrough
CT: control target
= control target key end

     0   :  { %s1034_s0 = inlined_call_operand.hbm [shape: f32[3,16,32], index: 0, kind: input, shape index: {}]   ;;  %s1035_s1 = inlined_call_operand.hbm [shape: f32[3,32,32], index: 1, kind: input, shape index: {}]   ;;  %s1036_s2 = inlined_call_operand.hbm [shape: f32[3,1,32], index: 2, kind: input, shape index: {}]   ;;  %s1037_s3 = inlined_call_operand.hbm [shape: f32[3,16,32], index: 3, kind: output, shape index: {}]  }
   0x1   :  { %1042 = sst [smem:[#allocation18_spill]] %s1035_s1 }
   0x2   :  { %8 = vsyncpa [#allocation4], 0 }
   0x3   :  { %10 = vsyncpa [#allocation4 + $0x1], 0 }
   0x4   :  { %11 = vsyncpa [#allocation7], 0 }
   0x5   :  { %13 = vsyncpa [#allocation7 + $0x1], 0 }
   0x6   :  { %14 = vsyncpa [#allocation5], 0 }
   0x7   :  { %16 = vsyncpa [#allocation5 + $0x1], 0  ;;  %s860_s12 = smov 0   ;;  %s862_s13 = smov 0  }
   0x8   :  { %s864_s14 = smov 0   ;;  %s866_s15 = smov 0  }
   0x9   :  { %s868_s16 = smov 0   ;;  %s870_s17 = smov 0  }
   0xa LB: > { %1043 = sst [smem:[#allocation13_spill]] %s813_s12  ;;  %s891_s18 = sadd.s32 4294967295, %s833_s17   ;;  %s833_s17 = sphi %s870_s17, %s22_s17   ;;  %s829_s16 = sphi %s868_s16, %s1062_s16   ;;  %s825_s15 = sphi %s866_s15, %s1061_s15   ;;  %s821_s14 = sphi %s864_s14, %s1057_s14   ;;  %s817_s13 = sphi %s862_s13, %s1060_s13   ;;  %s813_s12 = sphi %s860_s12, %s1059_s12  }
   0xb   : > { %1044 = sst [smem:[#allocation14_spill]] %s821_s14  ;;  %s548_s19 = sadd.s32 4294967294, %s833_s17  }
   0xc   : > { %s48_s20 = sadd.s32 1, %s829_s16  ;;  %s59_s21 = sadd.s32 1, %s821_s14 }
   0xd   : > { %p50_p0 = scmp.ge.s32.totalorder %s48_s20, 3  ;;  %p66_p1 = scmp.ne.s32.totalorder %s821_s14, %s817_s13 }
   0xe   : > { %p67_p2 = scmp.eq.s32.totalorder %s833_s17, 0  ;;  %p72_p3 = scmp.ne.s32.totalorder %s817_s13, %s813_s12 }
   0xf   : > { %s1064_s20 = smov (%p50_p0, %s48_s20), 0  ;;  %p73_p5 = scmp.eq.s32.totalorder %s891_s18, 0 }
  0x10   : > { %1045 = sst [smem:[#allocation15_spill]] %s1064_s20  ;;  %p68_p4 = por %p67_p2, %p66_p1 }
  0x11   : > { %s52_s22 = ssub.s32 %s829_s16, %s1064_s20  ;;  %p158_p6 = scmp.eq.s32.totalorder %s891_s18, 2 }
  0x12   : > { %p57_p7 = scmp.eq.s32.totalorder %s52_s22, 0  ;;  %p907_p8 = por %p73_p5, %p72_p3 }
  0x13   : > { %p911_p9 = por %p158_p6, %p66_p1  ;;  %p164_p10 = scmp.eq.s32.totalorder %s548_s19, 2 }
  0x14   : > { %s916_s25 = scalar_select %p57_p7, %s821_s14, %s59_s21  }
  0x15   : > { %p918_p11 = por %p164_p10, %p72_p3  ;;  %p601_p12 = scmp.lt.s32.totalorder %s833_s17, 3 }
  0x16   : > { %1048 = sst [smem:[#allocation16_spill]] %s916_s25  ;;  %s924_s27 = sand.u32 1, %s821_s14  }
  0x17   : > { %s1049_s26 = scalar_select %p918_p11, 1, 0 }
  0x18   : > { %p926_p13 = pnand %p601_p12, %p68_p4  ;;  %s209_s29 = sand.u32 1, %s833_s17  }
  0x19   : > { %1050 = sst [smem:[#allocation17_spill]] %s1049_s26  ;;  %s554_s30 = sshll.u32 %s924_s27, 5 }
  0x1a   : > { %s573_s4 = sshll.u32 %s829_s16, 5  ;;  %s213_s5 = scalar_lea.vmem [#allocation6], %s554_s30 }
  0x1b   : > { %s224_s6 = sshll.u32 %s213_s5, 4  ;;  %s1052_s1 = sld [smem:[#allocation18_spill]]  ;;  %s225_s6 = int_to_ptr.vmem [resolvable:$true] %s224_s6 }
  0x1c   : > { %p557_p0 = scmp.ge.s32.totalorder %s833_s17, 1  ;;  %p250_p1 = scmp.lt.s32.totalorder %s833_s17, 4 }
  0x1d   : > { %s210_s11 = scalar_lea.sflag [#allocation7], %s209_s29  ;;  %s835_s19 = smov 128  }
  0x1e   : > { %s836_s21 = smov 8   ;;  %p940_p2 = pnand %p557_p0, %p250_p1 }
  0x1f   : > { %s551_s30 = sshll.u32 %s924_s27, 4  ;;  %s185_s29 = scalar_lea.sflag [#allocation4], %s924_s27 }
  0x20   : > { %s241_s25 = scalar_lea.hbm %s1036_s2, %s829_s16  ;;  %s237_s26 = scalar_lea.vmem [#allocation8], %s924_s27 }
  0x21   : > { %s221_s9 = scalar_lea.hbm %s1052_s1, %s573_s4  ;;  %s572_s4 = sshll.u32 %s829_s16, 4 }
  0x22   : > { %s222_s10 = sshll.u32 %s221_s9, 4  ;;  %s196_s8 = scalar_lea.hbm %s1034_s0, %s572_s4  ;;  %s223_s10 = int_to_ptr.hbm [resolvable:$true] %s222_s10 }
  0x23   : > { %593 = dma.hbm_to_vmem [thread:$0]  (!%p926_p13), %s223_s10, 512, %s225_s6, %s210_s11, %s835_s19, %s835_s19, %s836_s21  }
  0x24   : > { %s197_s9 = sshll.u32 %s196_s8, 4  ;;  %s188_s1 = scalar_lea.vmem [#allocation3], %s551_s30  ;;  %s198_s9 = int_to_ptr.hbm [resolvable:$true] %s197_s9 }
  0x25   : > { %s199_s20 = sshll.u32 %s188_s1, 4  ;;  %s243_s14 = sshll.u32 %s241_s25, 4  ;;  %s200_s20 = int_to_ptr.vmem [resolvable:$true] %s199_s20  ;;  %s244_s14 = int_to_ptr.hbm [resolvable:$true] %s243_s14 }
  0x26   : > { %590 = dma.hbm_to_vmem [thread:$0]  (!%p926_p13), %s198_s9, 256, %s200_s20, %s185_s29, %s835_s19, %s835_s19, %s836_s21  }
  0x27   : > { %s245_s12 = sshll.u32 %s237_s26, 4  ;;  %254 = sbr.rel (%p940_p2) target bundleno = 207 (0xcf), region = 32  ;;  %s246_s12 = int_to_ptr.vmem [resolvable:$true] %s245_s12 }
  0x28   : > { %596 = dma.hbm_to_vmem [thread:$0]  (!%p926_p13), %s244_s14, 16, %s246_s12, %s210_s11  }
  0x29   : > { %s962_s1 = sand.u32 (!%p940_p2), 1, %s817_s13  }
  0x2a   : > { %s558_s20 = sshll.u32 (!%p940_p2), %s962_s1, 4  ;;  %s257_s19 = scalar_lea.sflag (!%p940_p2), [#allocation4], %s962_s1 }
  0x2b   : > { %s260_s25 = scalar_lea.vmem (!%p940_p2), [#allocation3], %s558_s20 }
  0x2c   : > { %800 = dma.done.wait (%p907_p8), %s257_s19, 256  }
  0x2d   : > { %802 = vsyncadd (%p907_p8), %s257_s19, 4294967040  ;;  %s266_s12 = sand.u32 1, %s891_s18   ;;  %s559_s14 = sshll.u32 %s962_s1, 5 }
  0x2e   : > { %s267_s26 = scalar_lea.sflag [#allocation7], %s266_s12  ;;  %s270_s27 = scalar_lea.vmem [#allocation6], %s559_s14 }
  0x2f   : > { %804 = dma.done.wait (%p907_p8), %s267_s26, 528  }
  0x30   : > { %806 = vsyncadd (%p907_p8), %s267_s26, 4294966768  ;;  %vm319_vm0 = vcmask 261120   ;;  %v837_v0 = vmov 0.0   ;;  %v329_v1 = vld [vmem:[%s270_s27 + $0x18] sm:$0xff]  ;;  %v328_v2 = vld [vmem:[%s270_s27 + $0x10] sm:$0xff]  ;;  %s279_s18 = scalar_lea.vmem [#allocation8], %s962_s1 }
  0x31   : > { %320 = vst.msk [vmem:[#allocation2] sm:$0xff] %vm319_vm0, %v837_v0  ;;  %561 = vmatpush.xpose.msk.msra.mxu0 %vm319_vm0, %v329_v1  ;;  %575 = vmatpush.xpose.msk.msra.mxu1 %vm319_vm0, %v329_v1  ;;  %v327_v3 = vld [vmem:[%s270_s27 + $0x8] sm:$0xff]  ;;  %v326_v4 = vld [vmem:[%s270_s27] sm:$0xff]  ;;  %s574_s23 = sshll.u32 %s825_s15, 4  ;;  %v656_v13 = vld [vmem:[%s279_s18] ss:$0 sm:$0xff] }
  0x32   : > { %321 = vst.msk [vmem:[#allocation2 + $0x8] sm:$0xff] %vm319_vm0, %v837_v0  ;;  %v324_v5 = vld [vmem:[%s260_s25] sm:$0xff]  ;;  %v325_v6 = vld [vmem:[%s260_s25 + $0x8] sm:$0xff]  ;;  %s404_s21 = scalar_lea.hbm %s1037_s3, %s574_s23  ;;  %s311_s22 = scalar_lea.vmem [#allocation9], %s558_s20 }
  0x33   : > { %s405_s30 = sshll.u32 %s311_s22, 4  ;;  %s407_s4 = sshll.u32 %s404_s21, 4  ;;  %s406_s30 = int_to_ptr.vmem [resolvable:$true] %s405_s30  ;;  %s408_s4 = int_to_ptr.hbm [resolvable:$true] %s407_s4 }
  0x34   : > { %s390_s15 = scalar_lea.sflag [#allocation5], %s962_s1  ;;  %s761_s5 = sshra.s32 %s408_s4, 4  ;;  %s762_s5 = int_to_ptr.hbm [resolvable:$true] %s761_s5 }
  0x35   : > { %562 = vmatpush.xpose.msk.msra.mxu0 %vm319_vm0, %v328_v2  ;;  %576 = vmatpush.xpose.msk.msra.mxu1 %vm319_vm0, %v328_v2  ;;  %s763_s7 = scalar_lea.hbm %s762_s5, 16  ;;  %s767_s29 = scalar_lea.hbm %s1037_s3, 48 }
  0x36   : > { %p764_p3 = scmp.ne.s32.totalorder %s762_s5, %s763_s7  ;;  %p768_p6 = scmp.lt.s32.totalorder %s762_s5, %s1037_s3 }
  0x37   : > { %p769_p7 = scmp.lt.s32.totalorder %s767_s29, %s763_s7 }
  0x38   : > { %v322_v7 = vld [vmem:[#allocation2] sm:$0xff]  ;;  %p765_p4 = pnand %p764_p3, %p911_p9 }
  0x39   : > { %563 = vmatpush.xpose.msk.msra.mxu0 %vm319_vm0, %v327_v3  ;;  %577 = vmatpush.xpose.msk.msra.mxu1 %vm319_vm0, %v327_v3  ;;  %v323_v8 = vld [vmem:[#allocation2 + $0x8] sm:$0xff]  ;;  %p770_p8 = por %p769_p7, %p768_p6 }
  0x3a   : > { %p766_p5 = pneg %p765_p4 }
  0x3c   : > { %p771_p10 = pnand %p770_p8, %p766_p5 }
  0x3d   : > { %564 = vmatpush.xpose.msk.msra.mxu0 %vm319_vm0, %v326_v4  ;;  %578 = vmatpush.xpose.msk.msra.mxu1 %vm319_vm0, %v326_v4 }
  0x40   : > { %565 = vmatmul.msk.f32.vlgmr.msra.gmra.mxu0 %vm319_vm0, %v324_v5  ;;  %566 = vmatmul.msk.f32.vlgmr.msra.gmra.mxu1 %vm319_vm0, %v325_v6 }
  0xbd   : > { %v366_v9 = vpop.f32.mrf.mxu0  ;;  %v369_v10 = vpop.f32.mrf.mxu1 }
  0xbe   : > { %v372_v11 = vadd.f32 %v366_v9, %v322_v7  ;;  %v373_v12 = vadd.f32 %v369_v10, %v323_v8 }
  0xc0   : > { %374 = vst.msk [vmem:[#allocation2] sm:$0xff] %vm319_vm0, %v372_v11 }
  0xc1   : > { %375 = vst.msk [vmem:[#allocation2 + $0x8] sm:$0xff] %vm319_vm0, %v373_v12 }
  0xc7   : > { %v379_v14 = vld [vmem:[#allocation2] sm:$0xff] }
  0xc8   : > { %v380_v15 = vld [vmem:[#allocation2 + $0x8] sm:$0xff]  ;;  %v385_v16 = vadd.f32 %v656_v13, %v379_v14 }
  0xc9   : > { %v386_v17 = vadd.f32 %v656_v13, %v380_v15 }
  0xca   : > { %387 = vst.msk [vmem:[%s311_s22] sm:$0xff] %vm319_vm0, %v385_v16 }
  0xcb   : > { %388 = vst.msk [vmem:[%s311_s22 + $0x8] sm:$0xff] %vm319_vm0, %v386_v17 }
  0xcc   : > { %774 = shalt.err (!%p771_p10)
}
  0xcd   : > { %s838_s1 = smov 128   ;;  %s839_s20 = smov 8  }
  0xce   : > { %585 = dma.vmem_to_hbm [thread:$0]  (%p911_p9), %s406_s30, 256, %s408_s4, %s390_s15, %s838_s1, %s838_s1, %s839_s20  }
  0xcf PF: > { %s1054_s19 = sld [smem:[#allocation13_spill]]  ;;  %p602_p12 = scmp.ge.s32.totalorder %s833_s17, 2 }
  0xd1   : > { %p598_p13 = pnand %p602_p12, %p918_p11 }
  0xd3   : > { %p599_p0 = pneg %p598_p13 }
  0xd5   : > { %s422_s12 = sand.u32 1, %s1054_s19  }
  0xd6   : > { %s423_s14 = scalar_lea.sflag [#allocation5], %s422_s12 }
  0xd7   : > { %808 = dma.done.wait (%p599_p0), %s423_s14, 256  }
  0xd8   : > { %810 = vsyncadd (%p599_p0), %s423_s14, 4294967040  ;;  %s22_s17 = sadd.s32 1, %s833_s17   ;;  %s1056_s26 = sld [smem:[#allocation14_spill]] }
  0xd9   : > { %p19_p1 = scmp.ge.s32.totalorder %s22_s17, 5   ;;  %s1057_s14 = sld [smem:[#allocation16_spill]] }
  0xda   : > { %s1058_s24 = sld [smem:[#allocation15_spill]]  ;;  %s1059_s12 = smov %s817_s13 }
  0xdb   : > { %s1061_s15 = smov %s829_s16 }
  0xdc   :  { %21 = sbr.rel (!%p19_p1) target bundleno = 10 (0xa), region = 109 }
  0xde   : > { %s1060_s13 = smov %s1056_s26 }
  0xe0   : > { %s1062_s16 = smov %s1058_s24 }
  0xe1   :  { %429 = vsyncpa [#allocation4], 1 }
  0xe2   :  { %431 = vsyncpa [#allocation4 + $0x1], 1 }
  0xe3   :  { %432 = vsyncpa [#allocation7], 1 }
  0xe4   :  { %434 = vsyncpa [#allocation7 + $0x1], 1 }
  0xe5   :  { %435 = vsyncpa [#allocation5], 1 }
  0xe6   :  { %437 = vsyncpa [#allocation5 + $0x1], 1 }

</bundles_post_ra>
